<compile_context>
chip_gen: v7x
topology: tpu7x:2x2x1
jax: 0.10.0
libtpu: 0.0.40
codegen_flags: <defaults>
</compile_context>

<pallas_src>
import functools

import jax
import jax.numpy as jnp
from jax.experimental import pallas as pl
from jax.experimental.pallas import tpu as pltpu


def _round_up(x, m):
    return (x + m - 1) // m * m


def epu_kernel(p_ref, wc_ref, wl_ref, bl_ref, interp_ref, *, batch, hw, group):
    """One grid step processes `group` subnetworks.

    Per subnetwork: im2col conv matmul (bias folded in) -> ReLU -> global
    average pool -> linear head. Everything lane-dense (last dim = 128*k).
    """
    for g in range(group):  # static, tiny unrolled loop
        # Single im2col matmul on the MXU: (B*H*W, Kp) @ (Kp, Chp), bf16 in,
        # f32 accumulate. The conv bias rides in via the ones column of p.
        acc = jnp.dot(p_ref[g], wc_ref[g], preferred_element_type=jnp.float32)
        acc = jnp.maximum(acc, 0.0)                                   # ReLU, f32

        # Global average pool over H*W (cross-sublane reduce; Chp stays in lanes).
        feat = acc.reshape(batch, hw, acc.shape[-1]).mean(axis=1)     # (B, Chp) f32

        # Linear head -> per-class contributions (lane-padded to Ncp).
        contrib = jnp.dot(feat.astype(jnp.bfloat16), wl_ref[g],
                          preferred_element_type=jnp.float32) + bl_ref[g]
        interp_ref[g] = contrib.astype(interp_ref.dtype)


@functools.partial(jax.jit, static_argnames=("group",))
def epu_forward(x_nchw, wconv, bconv, wlin, blin, abias, *, group=1):
    """x_nchw: (S, B, Cin, H, W) float32. Returns (out (B,Nc), interps (S,B,Nc))."""
    S, B, Cin, H, W = x_nchw.shape
    Ch = wconv.shape[-1]
    Nc = wlin.shape[-1]
    assert S % group == 0, "group must divide n_subnetworks"

    Kc = 9 * Cin
    Kp = _round_up(Kc + 1, 128)    # +1 column of ones carries the conv bias
    Chp = _round_up(Ch, 128)
    Ncp = _round_up(Nc, 128)

    # ---- data / weight packing (layout plumbing; in production the weight
    # ---- packing would be done once at parameter-preparation time) ----------
    # im2col patches, bf16, lane-dense last dim Kp.
    x = jnp.transpose(x_nchw, (0, 1, 3, 4, 2))                        # NCHW -> NHWC
    xp = jnp.pad(x, ((0, 0), (0, 0), (1, 1), (1, 1), (0, 0)))
    cols = [xp[:, :, dh:dh + H, dw:dw + W, :] for dh in range(3) for dw in range(3)]
    patches = jnp.concatenate(cols, axis=-1).reshape(S, B * H * W, Kc)
    patches = jnp.concatenate(
        [patches, jnp.ones((S, B * H * W, 1), patches.dtype)], axis=-1)
    patches = jnp.pad(patches, ((0, 0), (0, 0), (0, Kp - Kc - 1)))
    patches = patches.astype(jnp.bfloat16)
    # TODO(synk): for large images, do the im2col in-kernel with pltpu.roll to
    #             avoid the 9x HBM blowup; at these sizes the wrapper gather wins.

    # Conv weights (S, Kp, Chp) bf16 with the conv bias folded in as the extra K row.
    wc = jnp.concatenate([wconv.reshape(S, Kc, Ch), bconv.reshape(S, 1, Ch)], axis=1)
    wc = jnp.pad(wc, ((0, 0), (0, Kp - Kc - 1), (0, Chp - Ch))).astype(jnp.bfloat16)

    # Head weights / bias, lane-padded.
    wl = jnp.pad(wlin, ((0, 0), (0, Chp - Ch), (0, Ncp - Nc))).astype(jnp.bfloat16)
    bl = jnp.pad(blin.reshape(S, 1, Nc), ((0, 0), (0, 0), (0, Ncp - Nc)))  # f32

    kernel = functools.partial(epu_kernel, batch=B, hw=H * W, group=group)
    grid_spec = pltpu.PrefetchScalarGridSpec(
        num_scalar_prefetch=0,
        grid=(S // group,),
        in_specs=[
            pl.BlockSpec((group, B * H * W, Kp), lambda s: (s, 0, 0)),  # im2col patches
            pl.BlockSpec((group, Kp, Chp), lambda s: (s, 0, 0)),        # conv weight (+bias row)
            pl.BlockSpec((group, Chp, Ncp), lambda s: (s, 0, 0)),       # head weight
            pl.BlockSpec((group, 1, Ncp), lambda s: (s, 0, 0)),         # head bias
        ],
        out_specs=pl.BlockSpec((group, B, Ncp), lambda s: (s, 0, 0)),   # interpretations
    )
    interps_padded = pl.pallas_call(
        kernel,
        grid_spec=grid_spec,
        out_shape=jax.ShapeDtypeStruct((S, B, Ncp), jnp.float32),
        compiler_params=pltpu.CompilerParams(
            # No resident accumulator -> the subnetwork axis is truly parallel
            # (shards across both TensorCores on v7x).
            dimension_semantics=("parallel",)),
    )(patches, wc, wl, bl)

    interps = interps_padded[:, :, :Nc]                                # (S, B, Nc)
    # AdditiveLayer: trivially cheap reduction + bias + sigmoid, done in XLA so
    # the kernel's S axis can stay parallel.
    out = jax.nn.sigmoid(interps.sum(axis=0) + abias)
    return out, interps


def epu_reference(x_nchw, wconv, bconv, wlin, blin, abias):
    """Pure-JAX f32 reference matching the PyTorch forward semantics."""
    S, B, Cin, H, W = x_nchw.shape
    xs = jnp.transpose(x_nchw, (0, 1, 3, 4, 2))
    xs = jnp.pad(xs, ((0, 0), (0, 0), (1, 1), (1, 1), (0, 0)))
    interps = []
    for s in range(S):
        acc = jnp.zeros((B, H, W, wconv.shape[-1]), jnp.float32)
        for dh in range(3):
            for dw in range(3):
                acc = acc + jnp.einsum('bhwc,cd->bhwd',
                                       xs[s, :, dh:dh + H, dw:dw + W, :],
                                       wconv[s, dh, dw])
        acc = jnp.maximum(acc + bconv[s, 0], 0.0)
        feat = acc.mean(axis=(1, 2))
        interps.append(feat @ wlin[s] + blin[s, 0])
    stacked = jnp.stack(interps)
    return jax.nn.sigmoid(stacked.sum(axis=0) + abias[0]), stacked


if __name__ == "__main__":
    # Small deterministic setup.
    S, B, Cin, H, W = 4, 2, 4, 16, 16   # n_subnetworks, batch, channels, spatial
    Ch, Nc = 32, 3                       # subnetwork hidden channels, n_classes

    key = jax.random.PRNGKey(0)
    k = iter(jax.random.split(key, 8))
    x = jax.random.normal(next(k), (S, B, Cin, H, W), jnp.float32)
    wconv = jax.random.normal(next(k), (S, 3, 3, Cin, Ch), jnp.float32) * 0.1
    bconv = jax.random.normal(next(k), (S, 1, Ch), jnp.float32) * 0.1
    wlin = jax.random.normal(next(k), (S, Ch, Nc), jnp.float32) * 0.1
    blin = jax.random.normal(next(k), (S, 1, Nc), jnp.float32) * 0.1
    abias = jax.random.normal(next(k), (1, Nc), jnp.float32) * 0.1

    out, interps = epu_forward(x, wconv, bconv, wlin, blin, abias, group=2)
    out = jax.block_until_ready(out)
    interps = jax.block_until_ready(interps)

    ref_out, ref_interps = epu_reference(x, wconv, bconv, wlin, blin, abias)
    assert out.shape == (B, Nc) and interps.shape == (S, B, Nc)
    # bf16 matmul operands with f32 accumulation -> loosened tolerance vs f32 ref.
    assert jnp.allclose(out, ref_out, atol=3e-2, rtol=3e-2), "additive output mismatch"
    assert jnp.allclose(interps, ref_interps, atol=3e-2, rtol=3e-2), "interpretations mismatch"

    print("KERNEL_OK")
</pallas_src>

<mosaic_0001>
module attributes {stable_mosaic.version = 11 : i64} {
  func.func @epu_kernel(%arg0: i32, %arg1: memref<2x512x128xbf16, #tpu.memory_space<vmem>>, %arg2: memref<2x128x128xbf16, #tpu.memory_space<vmem>>, %arg3: memref<2x128x128xbf16, #tpu.memory_space<vmem>>, %arg4: memref<2x1x128xf32, #tpu.memory_space<vmem>>, %arg5: memref<2x2x128xf32, #tpu.memory_space<vmem>>) attributes {dimension_semantics = [#tpu.dimension_semantics<parallel>], iteration_bounds = array<i64: 2>, scalar_prefetch = 0 : i64, scratch_operands = 0 : i64, tpu.core_type = #tpu.core_type<tc>, window_params = [{transform_indices = @transform_0, window_bounds = array<i64: 2, 512, 128>}, {transform_indices = @transform_1, window_bounds = array<i64: 2, 128, 128>}, {transform_indices = @transform_2, window_bounds = array<i64: 2, 128, 128>}, {transform_indices = @transform_3, window_bounds = array<i64: 2, 1, 128>}, {transform_indices = @transform_4, window_bounds = array<i64: 2, 2, 128>}]} {
    %c0 = arith.constant 0 : index
    %c0_0 = arith.constant 0 : index
    %c0_1 = arith.constant 0 : index
    %0 = vector.load %arg1[%c0, %c0_0, %c0_1] : memref<2x512x128xbf16, #tpu.memory_space<vmem>>, vector<1x512x128xbf16>
    %1 = vector.shape_cast %0 : vector<1x512x128xbf16> to vector<512x128xbf16>
    %c0_2 = arith.constant 0 : index
    %c0_3 = arith.constant 0 : index
    %c0_4 = arith.constant 0 : index
    %2 = vector.load %arg2[%c0_2, %c0_3, %c0_4] : memref<2x128x128xbf16, #tpu.memory_space<vmem>>, vector<1x128x128xbf16>
    %3 = vector.shape_cast %2 : vector<1x128x128xbf16> to vector<128x128xbf16>
    %cst = arith.constant dense<0.000000e+00> : vector<512x128xf32>
    %4 = tpu.matmul %1, %3, %cst {dimension_numbers = #tpu.dot_dimension_numbers<[1], [0], [0], [1], [0, 0, 1, 1], [], []>} : vector<512x128xbf16>, vector<128x128xbf16>, vector<512x128xf32> -> vector<512x128xf32>
    %cst_5 = arith.constant 0.000000e+00 : f32
    %5 = vector.broadcast %cst_5 : f32 to vector<512x128xf32>
    %6 = arith.maximumf %4, %5 : vector<512x128xf32>
    %7 = vector.shape_cast %6 : vector<512x128xf32> to vector<2x256x128xf32>
    %cst_6 = arith.constant dense<0.000000e+00> : vector<2x128xf32>
    %8 = vector.multi_reduction <add>, %7, %cst_6 [1] : vector<2x256x128xf32> to vector<2x128xf32>
    %cst_7 = arith.constant 2.560000e+02 : f32
    %9 = vector.broadcast %cst_7 : f32 to vector<2x128xf32>
    %10 = arith.divf %8, %9 : vector<2x128xf32>
    %11 = arith.truncf %10 : vector<2x128xf32> to vector<2x128xbf16>
    %c0_8 = arith.constant 0 : index
    %c0_9 = arith.constant 0 : index
    %c0_10 = arith.constant 0 : index
    %12 = vector.load %arg3[%c0_8, %c0_9, %c0_10] : memref<2x128x128xbf16, #tpu.memory_space<vmem>>, vector<1x128x128xbf16>
    %13 = vector.shape_cast %12 : vector<1x128x128xbf16> to vector<128x128xbf16>
    %cst_11 = arith.constant dense<0.000000e+00> : vector<2x128xf32>
    %14 = tpu.matmul %11, %13, %cst_11 {dimension_numbers = #tpu.dot_dimension_numbers<[1], [0], [0], [1], [0, 0, 1, 1], [], []>} : vector<2x128xbf16>, vector<128x128xbf16>, vector<2x128xf32> -> vector<2x128xf32>
    %c0_12 = arith.constant 0 : index
    %c0_13 = arith.constant 0 : index
    %c0_14 = arith.constant 0 : index
    %15 = vector.load %arg4[%c0_12, %c0_13, %c0_14] : memref<2x1x128xf32, #tpu.memory_space<vmem>>, vector<1x1x128xf32>
    %16 = vector.shape_cast %15 : vector<1x1x128xf32> to vector<1x128xf32>
    %17 = vector.broadcast %16 : vector<1x128xf32> to vector<2x128xf32>
    %18 = arith.addf %14, %17 : vector<2x128xf32>
    %c0_15 = arith.constant 0 : index
    %c0_16 = arith.constant 0 : index
    %c0_17 = arith.constant 0 : index
    %19 = vector.load %arg5[%c0_15, %c0_16, %c0_17] : memref<2x2x128xf32, #tpu.memory_space<vmem>>, vector<1x2x128xf32>
    %20 = vector.shape_cast %19 : vector<1x2x128xf32> to vector<2x128xf32>
    %21 = vector.shape_cast %18 : vector<2x128xf32> to vector<1x2x128xf32>
    tpu.vector_store %arg5[%c0_15, %c0_16, %c0_17], %21 {strides = array<i32>} : memref<2x2x128xf32, #tpu.memory_space<vmem>>, vector<1x2x128xf32>,
    %c1 = arith.constant 1 : index
    %c0_18 = arith.constant 0 : index
    %c0_19 = arith.constant 0 : index
    %22 = vector.load %arg1[%c1, %c0_18, %c0_19] : memref<2x512x128xbf16, #tpu.memory_space<vmem>>, vector<1x512x128xbf16>
    %23 = vector.shape_cast %22 : vector<1x512x128xbf16> to vector<512x128xbf16>
    %c1_20 = arith.constant 1 : index
    %c0_21 = arith.constant 0 : index
    %c0_22 = arith.constant 0 : index
    %24 = vector.load %arg2[%c1_20, %c0_21, %c0_22] : memref<2x128x128xbf16, #tpu.memory_space<vmem>>, vector<1x128x128xbf16>
    %25 = vector.shape_cast %24 : vector<1x128x128xbf16> to vector<128x128xbf16>
    %cst_23 = arith.constant dense<0.000000e+00> : vector<512x128xf32>
    %26 = tpu.matmul %23, %25, %cst_23 {dimension_numbers = #tpu.dot_dimension_numbers<[1], [0], [0], [1], [0, 0, 1, 1], [], []>} : vector<512x128xbf16>, vector<128x128xbf16>, vector<512x128xf32> -> vector<512x128xf32>
    %cst_24 = arith.constant 0.000000e+00 : f32
    %27 = vector.broadcast %cst_24 : f32 to vector<512x128xf32>
    %28 = arith.maximumf %26, %27 : vector<512x128xf32>
    %29 = vector.shape_cast %28 : vector<512x128xf32> to vector<2x256x128xf32>
    %cst_25 = arith.constant dense<0.000000e+00> : vector<2x128xf32>
    %30 = vector.multi_reduction <add>, %29, %cst_25 [1] : vector<2x256x128xf32> to vector<2x128xf32>
    %cst_26 = arith.constant 2.560000e+02 : f32
    %31 = vector.broadcast %cst_26 : f32 to vector<2x128xf32>
    %32 = arith.divf %30, %31 : vector<2x128xf32>
    %33 = arith.truncf %32 : vector<2x128xf32> to vector<2x128xbf16>
    %c1_27 = arith.constant 1 : index
    %c0_28 = arith.constant 0 : index
    %c0_29 = arith.constant 0 : index
    %34 = vector.load %arg3[%c1_27, %c0_28, %c0_29] : memref<2x128x128xbf16, #tpu.memory_space<vmem>>, vector<1x128x128xbf16>
    %35 = vector.shape_cast %34 : vector<1x128x128xbf16> to vector<128x128xbf16>
    %cst_30 = arith.constant dense<0.000000e+00> : vector<2x128xf32>
    %36 = tpu.matmul %33, %35, %cst_30 {dimension_numbers = #tpu.dot_dimension_numbers<[1], [0], [0], [1], [0, 0, 1, 1], [], []>} : vector<2x128xbf16>, vector<128x128xbf16>, vector<2x128xf32> -> vector<2x128xf32>
    %c1_31 = arith.constant 1 : index
    %c0_32 = arith.constant 0 : index
    %c0_33 = arith.constant 0 : index
    %37 = vector.load %arg4[%c1_31, %c0_32, %c0_33] : memref<2x1x128xf32, #tpu.memory_space<vmem>>, vector<1x1x128xf32>
    %38 = vector.shape_cast %37 : vector<1x1x128xf32> to vector<1x128xf32>
    %39 = vector.broadcast %38 : vector<1x128xf32> to vector<2x128xf32>
    %40 = arith.addf %36, %39 : vector<2x128xf32>
    %c1_34 = arith.constant 1 : index
    %c0_35 = arith.constant 0 : index
    %c0_36 = arith.constant 0 : index
    %41 = vector.load %arg5[%c1_34, %c0_35, %c0_36] : memref<2x2x128xf32, #tpu.memory_space<vmem>>, vector<1x2x128xf32>
    %42 = vector.shape_cast %41 : vector<1x2x128xf32> to vector<2x128xf32>
    %43 = vector.shape_cast %40 : vector<2x128xf32> to vector<1x2x128xf32>
    tpu.vector_store %arg5[%c1_34, %c0_35, %c0_36], %43 {strides = array<i32>} : memref<2x2x128xf32, #tpu.memory_space<vmem>>, vector<1x2x128xf32>,
    return
  }
  func.func @transform_0(%arg0: i32) -> (i32, i32, i32) {
    %c0_i32 = arith.constant 0 : i32
    %c0_i32_0 = arith.constant 0 : i32
    %c0_i32_1 = arith.constant 0 : i32
    return %arg0, %c0_i32, %c0_i32_0 : i32, i32, i32
  }
  func.func @transform_1(%arg0: i32) -> (i32, i32, i32) {
    %c0_i32 = arith.constant 0 : i32
    %c0_i32_0 = arith.constant 0 : i32
    %c0_i32_1 = arith.constant 0 : i32
    return %arg0, %c0_i32, %c0_i32_0 : i32, i32, i32
  }
  func.func @transform_2(%arg0: i32) -> (i32, i32, i32) {
    %c0_i32 = arith.constant 0 : i32
    %c0_i32_0 = arith.constant 0 : i32
    %c0_i32_1 = arith.constant 0 : i32
    return %arg0, %c0_i32, %c0_i32_0 : i32, i32, i32
  }
  func.func @transform_3(%arg0: i32) -> (i32, i32, i32) {
    %c0_i32 = arith.constant 0 : i32
    %c0_i32_0 = arith.constant 0 : i32
    %c0_i32_1 = arith.constant 0 : i32
    return %arg0, %c0_i32, %c0_i32_0 : i32, i32, i32
  }
  func.func @transform_4(%arg0: i32) -> (i32, i32, i32) {
    %c0_i32 = arith.constant 0 : i32
    %c0_i32_0 = arith.constant 0 : i32
    %c0_i32_1 = arith.constant 0 : i32
    return %arg0, %c0_i32, %c0_i32_0 : i32, i32, i32
  }
}

</mosaic_0001>

<bundles_post_ra>
// kernel: epu_forward.1
= control target key start
LH: loop header
LB: loop body
LE: loop exit
PB: predicated region body
PF: predicated region fallthrough
CT: control target
= control target key end

     0   :  { %s2767_s15 = smov 0   ;;  %s2945_s0 = inlined_call_operand.vmem [shape: bf16[4,512,128], index: 0, kind: input, shape index: {}]   ;;  %s2946_s1 = inlined_call_operand.vmem [shape: bf16[4,128,128], index: 1, kind: input, shape index: {}]   ;;  %s2947_s2 = inlined_call_operand.vmem [shape: bf16[4,128,128], index: 2, kind: input, shape index: {}]   ;;  %s2948_s3 = inlined_call_operand.vmem [shape: f32[4,1,128], index: 3, kind: input, shape index: {}]   ;;  %s2949_s4 = inlined_call_operand.vmem [shape: f32[4,2,128], index: 4, kind: output, shape index: {}]  }
   0x1 LB: > { %s2110_s16 = sadd.s32 4294967295, %s2738_s15   ;;  %p2114_p0 = scmp.ge.s32.totalorder %s2738_s15, 1  ;;  %s2738_s15 = sphi %s2767_s15, %s14_s15  }
   0x2   : > { %p198_p1 = scmp.lt.s32.totalorder %s2738_s15, 3 }
   0x4   : > { %p199_p2 = pnand %p2114_p0, %p198_p1 }
   0x5   : > { %s2115_s17 = sshll.u32 (!%p199_p2), %s2110_s16, 1  ;;  %v2740_v41 = vmov (!%p199_p2), 0.0   ;;  %vm2741_vm0 = vmmov (!%p199_p2), 0   ;;  %vm1053_vm1 = vcmask (!%p199_p2), 1041409  }
   0x6   : > { %202 = sbr.rel (%p199_p2) target bundleno = 1024 (0x400), region = 36  ;;  %p242_p3 = scmp.lt.s32.totalorder (!%p199_p2), %s2115_s17, 3  ;;  %2506 = vmatprep.subr.bf16.mxu1 (!%p199_p2), %v2740_v41  ;;  %2522 = vmatprep.mubr.msk.bf16.mxu1 (!%p199_p2), %vm2741_vm0, %v2740_v41 }
   0xd   : > { %s2951_s17 = smov (!%p242_p3, %s2115_s17), 3 }
   0xe   : > { %s2326_s18 = sshll.u32 %s2951_s17, 6  ;;  %s2325_s22 = sshll.u32 %s2951_s17, 8 }
   0xf   : > { %s2783_s21 = scalar_lea.vmem %s2946_s1, %s2326_s18  ;;  %s2792_s25 = scalar_lea.vmem %s2945_s0, %s2325_s22 }
  0x10   : > { %v2636_v0 = vld [vmem:[%s2783_s21] sm:$0xff]   ;;  %v2637_v1 = vld [vmem:[%s2783_s21 + $0x8] sm:$0xff]   ;;  %v2638_v2 = vld [vmem:[%s2783_s21 + $0x10] sm:$0xff]   ;;  %s2836_s28 = scalar_lea.vmem %s2947_s2, %s2326_s18  ;;  %s2918_s5 = scalar_lea.vmem %s2948_s3, %s2951_s17 }
  0x11   : > { %2426 = vmatprep.subr.bf16.mxu0 %v2636_v0  ;;  %v2639_v3 = vld [vmem:[%s2783_s21 + $0x18] sm:$0xff]   ;;  %v2644_v4 = vld [vmem:[%s2792_s25] sm:$0xff]   ;;  %v2641_v6 = vld [vmem:[%s2783_s21 + $0x28] sm:$0xff]   ;;  %s2126_s6 = sshll.u32 %s2951_s17, 1 }
  0x12   : > { %2427 = vmatpush3.bf16.msra.mxu0 %v2636_v0  ;;  %2442 = vmatprep.mubr.bf16.mxu0 %v2644_v4  ;;  %v2640_v5 = vld [vmem:[%s2783_s21 + $0x20] sm:$0xff]   ;;  %v2642_v7 = vld [vmem:[%s2783_s21 + $0x30] sm:$0xff]   ;;  %v2643_v8 = vld [vmem:[%s2783_s21 + $0x38] sm:$0xff]   ;;  %s2927_s9 = scalar_lea.vmem %s2949_s4, %s2126_s6 }
  0x13   : > { %2428 = vmatprep.subr.bf16.mxu0 %v2637_v1  ;;  %v2645_v9 = vld [vmem:[%s2792_s25 + $0x8] sm:$0xff]   ;;  %v2646_v10 = vld [vmem:[%s2792_s25 + $0x10] sm:$0xff]   ;;  %v2647_v11 = vld [vmem:[%s2792_s25 + $0x18] sm:$0xff]  }
  0x14   : > { %v2648_v12 = vld [vmem:[%s2792_s25 + $0x20] sm:$0xff]   ;;  %v2649_v13 = vld [vmem:[%s2792_s25 + $0x28] sm:$0xff]   ;;  %v2650_v14 = vld [vmem:[%s2792_s25 + $0x30] sm:$0xff]  }
  0x15   : > { %v2651_v15 = vld [vmem:[%s2792_s25 + $0x38] sm:$0xff]   ;;  %v2652_v16 = vld [vmem:[%s2792_s25 + $0x40] sm:$0xff]   ;;  %v2653_v17 = vld [vmem:[%s2792_s25 + $0x48] sm:$0xff]  }
  0x16   : > { %2429 = vmatpush3.bf16.msra.mxu0 %v2637_v1  ;;  %v2654_v18 = vld [vmem:[%s2792_s25 + $0x50] sm:$0xff]   ;;  %v2655_v19 = vld [vmem:[%s2792_s25 + $0x58] sm:$0xff]   ;;  %v2656_v20 = vld [vmem:[%s2792_s25 + $0x60] sm:$0xff]  }
  0x17   : > { %2430 = vmatprep.subr.bf16.mxu0 %v2638_v2  ;;  %v2657_v21 = vld [vmem:[%s2792_s25 + $0x68] sm:$0xff]   ;;  %v2658_v22 = vld [vmem:[%s2792_s25 + $0x70] sm:$0xff]   ;;  %v2659_v23 = vld [vmem:[%s2792_s25 + $0x78] sm:$0xff]  }
  0x18   : > { %v2660_v24 = vld [vmem:[%s2792_s25 + $0x80] sm:$0xff]   ;;  %v2661_v25 = vld [vmem:[%s2792_s25 + $0x88] sm:$0xff]   ;;  %v2662_v26 = vld [vmem:[%s2792_s25 + $0x90] sm:$0xff]  }
  0x19   : > { %v2663_v27 = vld [vmem:[%s2792_s25 + $0x98] sm:$0xff]   ;;  %v2664_v28 = vld [vmem:[%s2792_s25 + $0xa0] sm:$0xff]   ;;  %v2665_v29 = vld [vmem:[%s2792_s25 + $0xa8] sm:$0xff]  }
  0x1a   : > { %2431 = vmatpush3.bf16.msra.mxu0 %v2638_v2  ;;  %v2666_v30 = vld [vmem:[%s2792_s25 + $0xb0] sm:$0xff]   ;;  %v2667_v31 = vld [vmem:[%s2792_s25 + $0xb8] sm:$0xff]   ;;  %v2668_v32 = vld [vmem:[%s2792_s25 + $0xc0] sm:$0xff]  }
  0x1b   : > { %2432 = vmatprep.subr.bf16.mxu0 %v2639_v3  ;;  %v2669_v33 = vld [vmem:[%s2792_s25 + $0xc8] sm:$0xff]   ;;  %v2670_v34 = vld [vmem:[%s2792_s25 + $0xd0] sm:$0xff]   ;;  %v2671_v35 = vld [vmem:[%s2792_s25 + $0xd8] sm:$0xff]  }
  0x1c   : > { %v2672_v36 = vld [vmem:[%s2792_s25 + $0xe0] sm:$0xff]   ;;  %v2673_v37 = vld [vmem:[%s2792_s25 + $0xe8] sm:$0xff]   ;;  %v2674_v38 = vld [vmem:[%s2792_s25 + $0xf0] sm:$0xff]  }
  0x1d   : > { %v2675_v39 = vld [vmem:[%s2792_s25 + $0xf8] sm:$0xff]   ;;  %v2676_v40 = vld [vmem:[%s2836_s28] sm:$0xff]   ;;  %v2677_v42 = vld [vmem:[%s2836_s28 + $0x8] sm:$0xff]  }
  0x1e   : > { %2433 = vmatpush3.bf16.msra.mxu0 %v2639_v3  ;;  %2507 = vmatpush3.bf16.msra.mxu1 %v2676_v40  ;;  %v2678_v43 = vld [vmem:[%s2836_s28 + $0x10] sm:$0xff]   ;;  %v2679_v48 = vld [vmem:[%s2836_s28 + $0x18] sm:$0xff]   ;;  %v2680_v53 = vld [vmem:[%s2836_s28 + $0x20] sm:$0xff]  }
  0x1f   : > { %2434 = vmatprep.subr.bf16.mxu0 %v2640_v5  ;;  %2508 = vmatprep.subr.bf16.mxu1 %v2740_v41  ;;  %v2681_v61 = vld [vmem:[%s2836_s28 + $0x28] sm:$0xff]   ;;  %v2682_v1 = vld [vmem:[%s2836_s28 + $0x30] sm:$0xff]  }
  0x22   : > { %2435 = vmatpush3.bf16.msra.mxu0 %v2640_v5  ;;  %2509 = vmatpush3.bf16.msra.mxu1 %v2677_v42 }
  0x23   : > { %2436 = vmatprep.subr.bf16.mxu0 %v2641_v6  ;;  %2510 = vmatprep.subr.bf16.mxu1 %v2740_v41 }
  0x26   : > { %2437 = vmatpush3.bf16.msra.mxu0 %v2641_v6  ;;  %2511 = vmatpush3.bf16.msra.mxu1 %v2678_v43 }
  0x27   : > { %2438 = vmatprep.subr.bf16.mxu0 %v2642_v7  ;;  %2512 = vmatprep.subr.bf16.mxu1 %v2740_v41 }
  0x2a   : > { %2439 = vmatpush3.bf16.msra.mxu0 %v2642_v7  ;;  %2513 = vmatpush3.bf16.msra.mxu1 %v2679_v48 }
  0x2b   : > { %2440 = vmatprep.subr.bf16.mxu0 %v2643_v8  ;;  %2514 = vmatprep.subr.bf16.mxu1 %v2740_v41 }
  0x2e   : > { %2441 = vmatpush3.bf16.msra.mxu0 %v2643_v8  ;;  %2515 = vmatpush3.bf16.msra.mxu1 %v2680_v53  ;;  %v2683_v8 = vld [vmem:[%s2836_s28 + $0x38] sm:$0xff]  }
  0x2f   : > { %2606 = vmatprep.subr.bf16.mxu0 %v2740_v41  ;;  %2516 = vmatprep.subr.bf16.mxu1 %v2740_v41 }
  0x31   : > { %2443 = vmatmul.mubr.bf16.vlgmr.msra.gmra.mrb[0].mxu0 %v2645_v9 }
  0x32   : > { %2446 = vmatprep.mubr.bf16.mxu0 %v2646_v10  ;;  %2517 = vmatpush3.bf16.msra.mxu1 %v2681_v61 }
  0x33   : > { %2518 = vmatprep.subr.bf16.mxu1 %v2740_v41 }
  0x36   : > { %2519 = vmatpush3.bf16.msra.mxu1 %v2682_v1 }
  0x37   : > { %2520 = vmatprep.subr.bf16.mxu1 %v2740_v41 }
  0x39   : > { %2447 = vmatmul.mubr.bf16.gmra.mrb[4].mxu0 %v2647_v11 }
  0x3a   : > { %2450 = vmatprep.mubr.bf16.mxu0 %v2648_v12  ;;  %v2858_v12 = vld [vmem:[%s2783_s21 + $0x40] sm:$0xff]   ;;  %2521 = vmatpush3.bf16.msra.mxu1 %v2683_v8 }
  0x3b   : > { %2526 = vmatprep.subr.bf16.mxu1 %v2858_v12 }
  0x41   : > { %2451 = vmatmul.mubr.bf16.gmra.mrb[8].mxu0 %v2649_v13 }
  0x42   : > { %2454 = vmatprep.mubr.bf16.mxu0 %v2650_v14 }
  0x49   : > { %2455 = vmatmul.mubr.bf16.gmra.mrb[12].mxu0 %v2651_v15 }
  0x4a   : > { %2458 = vmatprep.mubr.bf16.mxu0 %v2652_v16 }
  0x51   : > { %2459 = vmatmul.mubr.bf16.gmra.mrb[16].mxu0 %v2653_v17 }
  0x52   : > { %2462 = vmatprep.mubr.bf16.mxu0 %v2654_v18 }
  0x59   : > { %2463 = vmatmul.mubr.bf16.gmra.mrb[20].mxu0 %v2655_v19 }
  0x5a   : > { %2466 = vmatprep.mubr.bf16.mxu0 %v2656_v20 }
  0x61   : > { %2467 = vmatmul.mubr.bf16.gmra.mrb[24].mxu0 %v2657_v21 }
  0x62   : > { %2470 = vmatprep.mubr.bf16.mxu0 %v2658_v22 }
  0x69   : > { %2471 = vmatmul.mubr.bf16.gmra.mrb[28].mxu0 %v2659_v23 }
  0x6a   : > { %2474 = vmatprep.mubr.bf16.mxu0 %v2660_v24 }
  0x71   : > { %2475 = vmatmul.mubr.bf16.gmra.mrb[32].mxu0 %v2661_v25 }
  0x72   : > { %2478 = vmatprep.mubr.bf16.mxu0 %v2662_v26 }
  0x79   : > { %2479 = vmatmul.mubr.bf16.gmra.mrb[36].mxu0 %v2663_v27 }
  0x7a   : > { %2482 = vmatprep.mubr.bf16.mxu0 %v2664_v28 }
  0x81   : > { %2483 = vmatmul.mubr.bf16.gmra.mrb[40].mxu0 %v2665_v29 }
  0x82   : > { %2486 = vmatprep.mubr.bf16.mxu0 %v2666_v30 }
  0x89   : > { %2487 = vmatmul.mubr.bf16.gmra.mrb[44].mxu0 %v2667_v31 }
  0x8a   : > { %2490 = vmatprep.mubr.bf16.mxu0 %v2668_v32 }
  0x91   : > { %2491 = vmatmul.mubr.bf16.gmra.mrb[48].mxu0 %v2669_v33 }
  0x92   : > { %2494 = vmatprep.mubr.bf16.mxu0 %v2670_v34 }
  0x99   : > { %2495 = vmatmul.mubr.bf16.gmra.mrb[52].mxu0 %v2671_v35 }
  0x9a   : > { %2498 = vmatprep.mubr.bf16.mxu0 %v2672_v36 }
  0xa1   : > { %2499 = vmatmul.mubr.bf16.gmra.mrb[56].mxu0 %v2673_v37 }
  0xa2   : > { %2502 = vmatprep.mubr.bf16.mxu0 %v2674_v38 }
  0xa9   : > { %2503 = vmatmul.mubr.bf16.gmra.mrb[60].mxu0 %v2675_v39 }
  0xaa   : > { %2622 = vmatprep.mubr.msk.bf16.mxu0 %vm2741_vm0, %v2740_v41 }
 0x104   : > { %v2444_v44 = vpop.f32.mrb[0].mxu0 }
 0x105   : > { %v628_v45 = vpop.f32.mrb[1].mxu0  ;;  %v885_v51 = vmax.f32 %v2444_v44, 0.0 }
 0x106   : > { %v2445_v46 = vpop.f32.mrb[2].mxu0  ;;  %v883_v49 = vmax.f32 %v628_v45, 0.0 }
 0x107   : > { %v631_v47 = vpop.f32.mrb[3].mxu0  ;;  %v886_v54 = vmax.f32 %v2445_v46, 0.0 }
 0x108   : > { %v884_v50 = vmax.f32 %v631_v47, 0.0 }
 0x10a   : > { %v947_v52 = vadd.f32 %v884_v50, %v883_v49 }
 0x10c   : > { %v948_v55 = vadd.f32 %v947_v52, %v885_v51  ;;  %v2448_v56 = vpop.f32.mrb[4].mxu0 }
 0x10d   : > { %v644_v57 = vpop.f32.mrb[5].mxu0  ;;  %v889_v2 = vmax.f32 %v2448_v56, 0.0 }
 0x10e   : > { %v887_v58 = vmax.f32 %v644_v57, 0.0  ;;  %v949_v59 = vadd.f32 %v948_v55, %v886_v54  ;;  %v2449_v60 = vpop.f32.mrb[6].mxu0 }
 0x10f   : > { %v647_v62 = vpop.f32.mrb[7].mxu0  ;;  %v890_v4 = vmax.f32 %v2449_v60, 0.0 }
 0x110   : > { %v950_v63 = vadd.f32 %v949_v59, %v887_v58  ;;  %v888_v0 = vmax.f32 %v647_v62, 0.0 }
 0x112   : > { %v951_v3 = vadd.f32 %v950_v63, %v888_v0 }
 0x114   : > { %v952_v5 = vadd.f32 %v951_v3, %v889_v2  ;;  %v2452_v6 = vpop.f32.mrb[8].mxu0 }
 0x115   : > { %v660_v7 = vpop.f32.mrb[9].mxu0  ;;  %v893_v16 = vmax.f32 %v2452_v6, 0.0 }
 0x116   : > { %v891_v9 = vmax.f32 %v660_v7, 0.0  ;;  %v953_v10 = vadd.f32 %v952_v5, %v890_v4  ;;  %v2453_v11 = vpop.f32.mrb[10].mxu0 }
 0x117   : > { %v663_v13 = vpop.f32.mrb[11].mxu0  ;;  %v894_v18 = vmax.f32 %v2453_v11, 0.0 }
 0x118   : > { %v954_v14 = vadd.f32 %v953_v10, %v891_v9  ;;  %v892_v15 = vmax.f32 %v663_v13, 0.0 }
 0x11a   : > { %v955_v17 = vadd.f32 %v954_v14, %v892_v15 }
 0x11c   : > { %v956_v19 = vadd.f32 %v955_v17, %v893_v16  ;;  %v2456_v20 = vpop.f32.mrb[12].mxu0 }
 0x11d   : > { %v676_v21 = vpop.f32.mrb[13].mxu0  ;;  %v897_v28 = vmax.f32 %v2456_v20, 0.0 }
 0x11e   : > { %v895_v22 = vmax.f32 %v676_v21, 0.0  ;;  %v957_v23 = vadd.f32 %v956_v19, %v894_v18  ;;  %v2457_v24 = vpop.f32.mrb[14].mxu0 }
 0x11f   : > { %v679_v25 = vpop.f32.mrb[15].mxu0  ;;  %v898_v30 = vmax.f32 %v2457_v24, 0.0 }
 0x120   : > { %v958_v26 = vadd.f32 %v957_v23, %v895_v22  ;;  %v896_v27 = vmax.f32 %v679_v25, 0.0 }
 0x122   : > { %v959_v29 = vadd.f32 %v958_v26, %v896_v27 }
 0x124   : > { %v960_v31 = vadd.f32 %v959_v29, %v897_v28  ;;  %v2460_v32 = vpop.f32.mrb[16].mxu0 }
 0x125   : > { %v692_v33 = vpop.f32.mrb[17].mxu0  ;;  %v901_v40 = vmax.f32 %v2460_v32, 0.0 }
 0x126   : > { %v899_v34 = vmax.f32 %v692_v33, 0.0  ;;  %v961_v35 = vadd.f32 %v960_v31, %v898_v30  ;;  %v2461_v36 = vpop.f32.mrb[18].mxu0 }
 0x127   : > { %v695_v37 = vpop.f32.mrb[19].mxu0  ;;  %v902_v43 = vmax.f32 %v2461_v36, 0.0 }
 0x128   : > { %v962_v38 = vadd.f32 %v961_v35, %v899_v34  ;;  %v900_v39 = vmax.f32 %v695_v37, 0.0 }
 0x12a   : > { %v963_v42 = vadd.f32 %v962_v38, %v900_v39 }
 0x12c   : > { %v964_v44 = vadd.f32 %v963_v42, %v901_v40  ;;  %v2464_v45 = vpop.f32.mrb[20].mxu0 }
 0x12d   : > { %v708_v46 = vpop.f32.mrb[21].mxu0  ;;  %v905_v53 = vmax.f32 %v2464_v45, 0.0 }
 0x12e   : > { %v903_v47 = vmax.f32 %v708_v46, 0.0  ;;  %v965_v48 = vadd.f32 %v964_v44, %v902_v43  ;;  %v2465_v49 = vpop.f32.mrb[22].mxu0 }
 0x12f   : > { %v711_v50 = vpop.f32.mrb[23].mxu0  ;;  %v906_v55 = vmax.f32 %v2465_v49, 0.0 }
 0x130   : > { %v966_v51 = vadd.f32 %v965_v48, %v903_v47  ;;  %v904_v52 = vmax.f32 %v711_v50, 0.0 }
 0x132   : > { %v967_v54 = vadd.f32 %v966_v51, %v904_v52 }
 0x134   : > { %v968_v56 = vadd.f32 %v967_v54, %v905_v53  ;;  %v2468_v57 = vpop.f32.mrb[24].mxu0 }
 0x135   : > { %v724_v58 = vpop.f32.mrb[25].mxu0  ;;  %v909_v1 = vmax.f32 %v2468_v57, 0.0 }
 0x136   : > { %v907_v59 = vmax.f32 %v724_v58, 0.0  ;;  %v969_v60 = vadd.f32 %v968_v56, %v906_v55  ;;  %v2469_v61 = vpop.f32.mrb[26].mxu0 }
 0x137   : > { %v727_v62 = vpop.f32.mrb[27].mxu0  ;;  %v910_v3 = vmax.f32 %v2469_v61, 0.0 }
 0x138   : > { %v970_v63 = vadd.f32 %v969_v60, %v907_v59  ;;  %v908_v0 = vmax.f32 %v727_v62, 0.0 }
 0x13a   : > { %v971_v2 = vadd.f32 %v970_v63, %v908_v0 }
 0x13c   : > { %v972_v4 = vadd.f32 %v971_v2, %v909_v1  ;;  %v2472_v5 = vpop.f32.mrb[28].mxu0 }
 0x13d   : > { %v740_v6 = vpop.f32.mrb[29].mxu0  ;;  %v913_v14 = vmax.f32 %v2472_v5, 0.0 }
 0x13e   : > { %v911_v7 = vmax.f32 %v740_v6, 0.0  ;;  %v973_v8 = vadd.f32 %v972_v4, %v910_v3  ;;  %v2473_v9 = vpop.f32.mrb[30].mxu0 }
 0x13f   : > { %v743_v10 = vpop.f32.mrb[31].mxu0  ;;  %v914_v16 = vmax.f32 %v2473_v9, 0.0 }
 0x140   : > { %v974_v11 = vadd.f32 %v973_v8, %v911_v7  ;;  %v912_v13 = vmax.f32 %v743_v10, 0.0 }
 0x142   : > { %v975_v15 = vadd.f32 %v974_v11, %v912_v13 }
 0x144   : > { %v976_v17 = vadd.f32 %v975_v15, %v913_v14  ;;  %v2476_v18 = vpop.f32.mrb[32].mxu0 }
 0x145   : > { %v756_v19 = vpop.f32.mrb[33].mxu0  ;;  %v917_v25 = vmax.f32 %v2476_v18, 0.0 }
 0x146   : > { %v2861_v20 = vadd.f32 %v976_v17, %v914_v16  ;;  %v2477_v21 = vpop.f32.mrb[34].mxu0  ;;  %v915_v23 = vmax.f32 %v756_v19, 0.0 }
 0x147   : > { %v759_v22 = vpop.f32.mrb[35].mxu0  ;;  %v918_v27 = vmax.f32 %v2477_v21, 0.0 }
 0x148   : > { %v916_v24 = vmax.f32 %v759_v22, 0.0 }
 0x14a   : > { %v984_v26 = vadd.f32 %v916_v24, %v915_v23 }
 0x14c   : > { %v985_v28 = vadd.f32 %v984_v26, %v917_v25  ;;  %v2480_v29 = vpop.f32.mrb[36].mxu0 }
 0x14d   : > { %v772_v30 = vpop.f32.mrb[37].mxu0  ;;  %v921_v37 = vmax.f32 %v2480_v29, 0.0 }
 0x14e   : > { %v919_v31 = vmax.f32 %v772_v30, 0.0  ;;  %v986_v32 = vadd.f32 %v985_v28, %v918_v27  ;;  %v2481_v33 = vpop.f32.mrb[38].mxu0 }
 0x14f   : > { %v775_v34 = vpop.f32.mrb[39].mxu0  ;;  %v922_v39 = vmax.f32 %v2481_v33, 0.0 }
 0x150   : > { %v987_v35 = vadd.f32 %v986_v32, %v919_v31  ;;  %v920_v36 = vmax.f32 %v775_v34, 0.0  ;;  %v978_v34 = vrot.slane %v2861_v20, 4 }
 0x152   : > { %v988_v38 = vadd.f32 %v987_v35, %v920_v36 }
 0x154   : > { %v989_v40 = vadd.f32 %v988_v38, %v921_v37  ;;  %v2484_v42 = vpop.f32.mrb[40].mxu0 }
 0x155   : > { %v788_v43 = vpop.f32.mrb[41].mxu0  ;;  %v925_v50 = vmax.f32 %v2484_v42, 0.0 }
 0x156   : > { %v923_v44 = vmax.f32 %v788_v43, 0.0  ;;  %v990_v45 = vadd.f32 %v989_v40, %v922_v39  ;;  %v2485_v46 = vpop.f32.mrb[42].mxu0  ;;  %v979_v39 = vadd.f32 %v978_v34, %v2861_v20  ;;  %v2709_v34 = vld [vmem:[%s2792_s25 + $0x188] sm:$0xff]  }
 0x157   : > { %v791_v47 = vpop.f32.mrb[43].mxu0  ;;  %v926_v52 = vmax.f32 %v2485_v46, 0.0 }
 0x158   : > { %v991_v48 = vadd.f32 %v990_v45, %v923_v44  ;;  %v924_v49 = vmax.f32 %v791_v47, 0.0 }
 0x15a   : > { %v992_v51 = vadd.f32 %v991_v48, %v924_v49  ;;  %v980_v49 = vrot.slane %v979_v39, 2 }
 0x15c   : > { %v993_v53 = vadd.f32 %v992_v51, %v925_v50  ;;  %v2488_v54 = vpop.f32.mrb[44].mxu0 }
 0x15d   : > { %v804_v55 = vpop.f32.mrb[45].mxu0  ;;  %v929_v62 = vmax.f32 %v2488_v54, 0.0  ;;  %v981_v54 = vadd.f32 %v980_v49, %v979_v39  ;;  %v2714_v39 = vld [vmem:[%s2792_s25 + $0x1b0] sm:$0xff]   ;;  %v2724_v49 = vld [vmem:[%s2836_s28 + $0x40] sm:$0xff]  }
 0x15e   : > { %v927_v56 = vmax.f32 %v804_v55, 0.0  ;;  %v994_v57 = vadd.f32 %v993_v53, %v926_v52  ;;  %v2489_v58 = vpop.f32.mrb[46].mxu0  ;;  %2607 = vmatpush3.bf16.msra.mxu0 %v2724_v49 }
 0x15f   : > { %v807_v59 = vpop.f32.mrb[47].mxu0  ;;  %v930_v0 = vmax.f32 %v2489_v58, 0.0  ;;  %v982_v20 = vrot.slane %v981_v54, 1  ;;  %2608 = vmatprep.subr.bf16.mxu0 %v2740_v41 }
 0x160   : > { %v995_v60 = vadd.f32 %v994_v57, %v927_v56  ;;  %v928_v61 = vmax.f32 %v807_v59, 0.0 }
 0x162   : > { %v996_v63 = vadd.f32 %v995_v60, %v928_v61  ;;  %v983_v61 = vadd.f32 %v982_v20, %v981_v54  ;;  %v2728_v54 = vld [vmem:[%s2836_s28 + $0x60] sm:$0xff]  }
 0x164   : > { %v997_v1 = vadd.f32 %v996_v63, %v929_v62  ;;  %v2492_v2 = vpop.f32.mrb[48].mxu0 }
 0x165   : > { %v820_v3 = vpop.f32.mrb[49].mxu0  ;;  %v933_v10 = vmax.f32 %v2492_v2, 0.0 }
 0x166   : > { %v931_v4 = vmax.f32 %v820_v3, 0.0  ;;  %v998_v5 = vadd.f32 %v997_v1, %v930_v0  ;;  %v2493_v6 = vpop.f32.mrb[50].mxu0  ;;  %v1022_v0 = vmul.f32 0.00390625, %v983_v61  ;;  %v2730_v61 = vld [vmem:[%s2836_s28 + $0x70] sm:$0xff]  }
 0x167   : > { %v823_v7 = vpop.f32.mrb[51].mxu0  ;;  %v934_v13 = vmax.f32 %v2493_v6, 0.0 }
 0x168   : > { %v999_v8 = vadd.f32 %v998_v5, %v931_v4  ;;  %v932_v9 = vmax.f32 %v823_v7, 0.0  ;;  %v1024_v3 = vpack.c.bf16 %v1022_v0, %v1022_v0 }
 0x16a   : > { %v1000_v11 = vadd.f32 %v999_v8, %v932_v9  ;;  %v1051_v5 = vunpack.c.l.b16 %v1024_v3  ;;  %v2692_v8 = vld [vmem:[%s2792_s25 + $0x100] sm:$0xff]  }
 0x16c   : > { %v1001_v14 = vadd.f32 %v1000_v11, %v933_v10  ;;  %v2496_v15 = vpop.f32.mrb[52].mxu0  ;;  %v2685_v10 = vld [vmem:[%s2783_s21 + $0x48] sm:$0xff]   ;;  %v2686_v11 = vld [vmem:[%s2783_s21 + $0x50] sm:$0xff]  }
 0x16d   : > { %v836_v16 = vpop.f32.mrb[53].mxu0  ;;  %v937_v24 = vmax.f32 %v2496_v15, 0.0  ;;  %v2689_v15 = vld [vmem:[%s2783_s21 + $0x68] sm:$0xff]  }
 0x16e   : > { %v935_v17 = vmax.f32 %v836_v16, 0.0  ;;  %v1002_v18 = vadd.f32 %v1001_v14, %v934_v13  ;;  %v2497_v19 = vpop.f32.mrb[54].mxu0  ;;  %v2687_v13 = vld [vmem:[%s2783_s21 + $0x58] sm:$0xff]   ;;  %v2688_v14 = vld [vmem:[%s2783_s21 + $0x60] sm:$0xff]  }
 0x16f   : > { %v839_v21 = vpop.f32.mrb[55].mxu0  ;;  %v938_v26 = vmax.f32 %v2497_v19, 0.0  ;;  %v2691_v16 = vld [vmem:[%s2783_s21 + $0x78] sm:$0xff]  }
 0x170   : > { %v1003_v22 = vadd.f32 %v1002_v18, %v935_v17  ;;  %v936_v23 = vmax.f32 %v839_v21, 0.0  ;;  %v2693_v17 = vld [vmem:[%s2792_s25 + $0x108] sm:$0xff]   ;;  %v2694_v18 = vld [vmem:[%s2792_s25 + $0x110] sm:$0xff]   ;;  %v2695_v19 = vld [vmem:[%s2792_s25 + $0x118] sm:$0xff]  }
 0x171   : > { %v2696_v21 = vld [vmem:[%s2792_s25 + $0x120] sm:$0xff]  }
 0x172   : > { %v1004_v25 = vadd.f32 %v1003_v22, %v936_v23  ;;  %v2697_v22 = vld [vmem:[%s2792_s25 + $0x128] sm:$0xff]   ;;  %v2698_v23 = vld [vmem:[%s2792_s25 + $0x130] sm:$0xff]  }
 0x174   : > { %v1005_v27 = vadd.f32 %v1004_v25, %v937_v24  ;;  %v2500_v28 = vpop.f32.mrb[56].mxu0  ;;  %v2699_v24 = vld [vmem:[%s2792_s25 + $0x138] sm:$0xff]   ;;  %v2700_v25 = vld [vmem:[%s2792_s25 + $0x140] sm:$0xff]  }
 0x175   : > { %v852_v29 = vpop.f32.mrb[57].mxu0  ;;  %v941_v37 = vmax.f32 %v2500_v28, 0.0  ;;  %v2703_v28 = vld [vmem:[%s2792_s25 + $0x158] sm:$0xff]  }
 0x176   : > { %v939_v30 = vmax.f32 %v852_v29, 0.0  ;;  %v1006_v31 = vadd.f32 %v1005_v27, %v938_v26  ;;  %v2501_v32 = vpop.f32.mrb[58].mxu0  ;;  %v2701_v26 = vld [vmem:[%s2792_s25 + $0x148] sm:$0xff]   ;;  %v2702_v27 = vld [vmem:[%s2792_s25 + $0x150] sm:$0xff]   ;;  %v2704_v29 = vld [vmem:[%s2792_s25 + $0x160] sm:$0xff]  }
 0x177   : > { %v855_v33 = vpop.f32.mrb[59].mxu0  ;;  %v942_v40 = vmax.f32 %v2501_v32, 0.0  ;;  %v2707_v32 = vld [vmem:[%s2792_s25 + $0x178] sm:$0xff]  }
 0x178   : > { %v1007_v35 = vadd.f32 %v1006_v31, %v939_v30  ;;  %v940_v36 = vmax.f32 %v855_v33, 0.0  ;;  %v2705_v30 = vld [vmem:[%s2792_s25 + $0x168] sm:$0xff]   ;;  %v2706_v31 = vld [vmem:[%s2792_s25 + $0x170] sm:$0xff]   ;;  %v2708_v33 = vld [vmem:[%s2792_s25 + $0x180] sm:$0xff]  }
 0x17a   : > { %v1008_v38 = vadd.f32 %v1007_v35, %v940_v36  ;;  %v2710_v35 = vld [vmem:[%s2792_s25 + $0x190] sm:$0xff]   ;;  %v2711_v36 = vld [vmem:[%s2792_s25 + $0x198] sm:$0xff]  }
 0x17c   : > { %v1009_v42 = vadd.f32 %v1008_v38, %v941_v37  ;;  %v2504_v43 = vpop.f32.mrb[60].mxu0  ;;  %v2712_v37 = vld [vmem:[%s2792_s25 + $0x1a0] sm:$0xff]   ;;  %v2713_v38 = vld [vmem:[%s2792_s25 + $0x1a8] sm:$0xff]  }
 0x17d   : > { %v868_v44 = vpop.f32.mrb[61].mxu0  ;;  %v945_v52 = vmax.f32 %v2504_v43, 0.0  ;;  %v2717_v43 = vld [vmem:[%s2792_s25 + $0x1c8] sm:$0xff]  }
 0x17e   : > { %v943_v45 = vmax.f32 %v868_v44, 0.0  ;;  %v1010_v46 = vadd.f32 %v1009_v42, %v942_v40  ;;  %v2505_v47 = vpop.f32.mrb[62].mxu0  ;;  %v2715_v40 = vld [vmem:[%s2792_s25 + $0x1b8] sm:$0xff]   ;;  %v2716_v42 = vld [vmem:[%s2792_s25 + $0x1c0] sm:$0xff]   ;;  %v2718_v44 = vld [vmem:[%s2792_s25 + $0x1d0] sm:$0xff]  }
 0x17f   : > { %v871_v48 = vpop.f32.mrb[63].mxu0  ;;  %v946_v55 = vmax.f32 %v2505_v47, 0.0  ;;  %v2721_v47 = vld [vmem:[%s2792_s25 + $0x1e8] sm:$0xff]  }
 0x180   : > { %v1011_v50 = vadd.f32 %v1010_v46, %v943_v45  ;;  %v944_v51 = vmax.f32 %v871_v48, 0.0  ;;  %v2719_v45 = vld [vmem:[%s2792_s25 + $0x1d8] sm:$0xff]   ;;  %v2720_v46 = vld [vmem:[%s2792_s25 + $0x1e0] sm:$0xff]   ;;  %v2722_v48 = vld [vmem:[%s2792_s25 + $0x1f0] sm:$0xff]  }
 0x182   : > { %v1012_v53 = vadd.f32 %v1011_v50, %v944_v51  ;;  %v2723_v50 = vld [vmem:[%s2792_s25 + $0x1f8] sm:$0xff]   ;;  %v2725_v51 = vld [vmem:[%s2836_s28 + $0x48] sm:$0xff]  }
 0x183   : > { %2609 = vmatpush3.bf16.msra.mxu0 %v2725_v51 }
 0x184   : > { %v1013_v56 = vadd.f32 %v1012_v53, %v945_v52  ;;  %2610 = vmatprep.subr.bf16.mxu0 %v2740_v41  ;;  %v2726_v52 = vld [vmem:[%s2836_s28 + $0x50] sm:$0xff]   ;;  %v2727_v53 = vld [vmem:[%s2836_s28 + $0x58] sm:$0xff]  }
 0x186   : > { %v1014_v57 = vadd.f32 %v1013_v56, %v946_v55  ;;  %v2167_v55 = vld [vmem:[%s2918_s5] ss:$0 sm:$0xff] }
 0x187   : > { %2611 = vmatpush3.bf16.msra.mxu0 %v2726_v52 }
 0x188   : > { %v1015_v58 = vrot.slane %v1014_v57, 4  ;;  %2612 = vmatprep.subr.bf16.mxu0 %v2740_v41 }
 0x18a   : > { %v1016_v59 = vadd.f32 %v1015_v58, %v1014_v57 }
 0x18b   : > { %2613 = vmatpush3.bf16.msra.mxu0 %v2727_v53 }
 0x18c   : > { %v1017_v60 = vrot.slane %v1016_v59, 2  ;;  %2614 = vmatprep.subr.bf16.mxu0 %v2740_v41 }
 0x18e   : > { %v1018_v62 = vadd.f32 %v1017_v60, %v1016_v59  ;;  %v2729_v60 = vld [vmem:[%s2836_s28 + $0x68] sm:$0xff]  }
 0x18f   : > { %2615 = vmatpush3.bf16.msra.mxu0 %v2728_v54 }
 0x190   : > { %v1019_v63 = vrot.slane %v1018_v62, 1  ;;  %2616 = vmatprep.subr.bf16.mxu0 %v2740_v41 }
 0x192   : > { %v1020_v1 = vadd.f32 %v1019_v63, %v1018_v62 }
 0x193   : > { %2617 = vmatpush3.bf16.msra.mxu0 %v2729_v60 }
 0x194   : > { %v1023_v2 = vmul.f32 0.00390625, %v1020_v1  ;;  %2618 = vmatprep.subr.bf16.mxu0 %v2740_v41 }
 0x196   : > { %v1025_v4 = vpack.c.bf16 %v1023_v2, %v1023_v2 }
 0x197   : > { %2619 = vmatpush3.bf16.msra.mxu0 %v2730_v61 }
 0x198   : > { %v1052_v6 = vunpack.c.l.b16 %v1025_v4  ;;  %2620 = vmatprep.subr.bf16.mxu0 %v2740_v41 }
 0x19a   : > { %v1054_v7 = vsel %vm1053_vm1, %v1052_v6, %v1051_v5 }
 0x19b   : > { %v1055_v9 = vpack.c.b16 %v1054_v7, %v1054_v7 }
 0x19d   : > { %2523 = vmatmul.mubr.bf16.vlgmr.msra.gmra.mrb[0].mxu1 %v1055_v9 }
 0x19e   : > { %2527 = vmatpush3.bf16.msra.mxu1 %v2858_v12  ;;  %2542 = vmatprep.mubr.bf16.mxu1 %v2692_v8  ;;  %v2690_v12 = vld [vmem:[%s2783_s21 + $0x70] sm:$0xff]  }
 0x19f   : > { %2528 = vmatprep.subr.bf16.mxu1 %v2685_v10 }
 0x1a2   : > { %2529 = vmatpush3.bf16.msra.mxu1 %v2685_v10 }
 0x1a3   : > { %2530 = vmatprep.subr.bf16.mxu1 %v2686_v11 }
 0x1a6   : > { %2531 = vmatpush3.bf16.msra.mxu1 %v2686_v11 }
 0x1a7   : > { %2532 = vmatprep.subr.bf16.mxu1 %v2687_v13 }
 0x1aa   : > { %2533 = vmatpush3.bf16.msra.mxu1 %v2687_v13 }
 0x1ab   : > { %2534 = vmatprep.subr.bf16.mxu1 %v2688_v14 }
 0x1ae   : > { %2535 = vmatpush3.bf16.msra.mxu1 %v2688_v14 }
 0x1af   : > { %2536 = vmatprep.subr.bf16.mxu1 %v2689_v15 }
 0x1b2   : > { %2537 = vmatpush3.bf16.msra.mxu1 %v2689_v15 }
 0x1b3   : > { %2538 = vmatprep.subr.bf16.mxu1 %v2690_v12 }
 0x1b6   : > { %2539 = vmatpush3.bf16.msra.mxu1 %v2690_v12 }
 0x1b7   : > { %2540 = vmatprep.subr.bf16.mxu1 %v2691_v16 }
 0x1ba   : > { %2541 = vmatpush3.bf16.msra.mxu1 %v2691_v16 }
 0x1bd   : > { %2543 = vmatmul.mubr.bf16.vlgmr.msra.gmra.mrb[4].mxu1 %v2693_v17 }
 0x1be   : > { %2546 = vmatprep.mubr.bf16.mxu1 %v2694_v18 }
 0x1c5   : > { %2547 = vmatmul.mubr.bf16.gmra.mrb[8].mxu1 %v2695_v19 }
 0x1c6   : > { %2550 = vmatprep.mubr.bf16.mxu1 %v2696_v21 }
 0x1cd   : > { %2551 = vmatmul.mubr.bf16.gmra.mrb[12].mxu1 %v2697_v22 }
 0x1ce   : > { %2554 = vmatprep.mubr.bf16.mxu1 %v2698_v23 }
 0x1d5   : > { %2555 = vmatmul.mubr.bf16.gmra.mrb[16].mxu1 %v2699_v24 }
 0x1d6   : > { %2558 = vmatprep.mubr.bf16.mxu1 %v2700_v25 }
 0x1dd   : > { %2559 = vmatmul.mubr.bf16.gmra.mrb[20].mxu1 %v2701_v26 }
 0x1de   : > { %2562 = vmatprep.mubr.bf16.mxu1 %v2702_v27 }
 0x1e5   : > { %2563 = vmatmul.mubr.bf16.gmra.mrb[24].mxu1 %v2703_v28  ;;  %v2731_v28 = vld [vmem:[%s2836_s28 + $0x78] sm:$0xff]  }
 0x1e6   : > { %2566 = vmatprep.mubr.bf16.mxu1 %v2704_v29  ;;  %2621 = vmatpush3.bf16.msra.mxu0 %v2731_v28 }
 0x1ed   : > { %2567 = vmatmul.mubr.bf16.gmra.mrb[28].mxu1 %v2705_v30 }
 0x1ee   : > { %2570 = vmatprep.mubr.bf16.mxu1 %v2706_v31 }
 0x1f5   : > { %2571 = vmatmul.mubr.bf16.gmra.mrb[32].mxu1 %v2707_v32 }
 0x1f6   : > { %2574 = vmatprep.mubr.bf16.mxu1 %v2708_v33 }
 0x1fd   : > { %2575 = vmatmul.mubr.bf16.gmra.mrb[36].mxu1 %v2709_v34 }
 0x1fe   : > { %2578 = vmatprep.mubr.bf16.mxu1 %v2710_v35 }
 0x205   : > { %2579 = vmatmul.mubr.bf16.gmra.mrb[40].mxu1 %v2711_v36 }
 0x206   : > { %2582 = vmatprep.mubr.bf16.mxu1 %v2712_v37 }
 0x20d   : > { %2583 = vmatmul.mubr.bf16.gmra.mrb[44].mxu1 %v2713_v38 }
 0x20e   : > { %2586 = vmatprep.mubr.bf16.mxu1 %v2714_v39 }
 0x215   : > { %2587 = vmatmul.mubr.bf16.gmra.mrb[48].mxu1 %v2715_v40 }
 0x216   : > { %2590 = vmatprep.mubr.bf16.mxu1 %v2716_v42 }
 0x21d   : > { %2591 = vmatmul.mubr.bf16.gmra.mrb[52].mxu1 %v2717_v43 }
 0x21e   : > { %2594 = vmatprep.mubr.bf16.mxu1 %v2718_v44 }
 0x225   : > { %2595 = vmatmul.mubr.bf16.gmra.mrb[56].mxu1 %v2719_v45 }
 0x226   : > { %2598 = vmatprep.mubr.bf16.mxu1 %v2720_v46 }
 0x22d   : > { %2599 = vmatmul.mubr.bf16.gmra.mrb[60].mxu1 %v2721_v47 }
 0x22e   : > { %2602 = vmatprep.mubr.bf16.mxu1 %v2722_v48 }
 0x235   : > { %2603 = vmatmul.mubr.bf16.gmra.mrb[64].mxu1 %v2723_v50 }
 0x270   : > { %v1139_v56 = vpop.f32.mrb[0].mxu1 }
 0x271   : > { %v1140_v57 = vadd.f32 %v2167_v55, %v1139_v56  ;;  %v2524_v58 = vpop.f32.mrb[1].mxu1 }
 0x272   : > { %v1142_v20 = vpop.f32.mrb[2].mxu1 }
 0x273   : > { %1145 = vst [vmem:[%s2927_s9] sm:$0x3] %v1140_v57  ;;  %v2525_v59 = vpop.f32.mrb[3].mxu1 }
 0x290   : > { %v2544_v62 = vpop.f32.mrb[4].mxu1 }
 0x291   : > { %v1502_v63 = vpop.f32.mrb[5].mxu1  ;;  %v1759_v4 = vmax.f32 %v2544_v62, 0.0 }
 0x292   : > { %v2545_v0 = vpop.f32.mrb[6].mxu1  ;;  %v1757_v2 = vmax.f32 %v1502_v63, 0.0 }
 0x293   : > { %v1505_v1 = vpop.f32.mrb[7].mxu1  ;;  %v1760_v6 = vmax.f32 %v2545_v0, 0.0 }
 0x294   : > { %v1758_v3 = vmax.f32 %v1505_v1, 0.0 }
 0x296   : > { %v1821_v5 = vadd.f32 %v1758_v3, %v1757_v2 }
 0x298   : > { %v1822_v7 = vadd.f32 %v1821_v5, %v1759_v4  ;;  %v2548_v8 = vpop.f32.mrb[8].mxu1 }
 0x299   : > { %v1518_v9 = vpop.f32.mrb[9].mxu1  ;;  %v1763_v41 = vmax.f32 %v2548_v8, 0.0 }
 0x29a   : > { %v1761_v10 = vmax.f32 %v1518_v9, 0.0  ;;  %v1823_v11 = vadd.f32 %v1822_v7, %v1760_v6  ;;  %v2549_v13 = vpop.f32.mrb[10].mxu1 }
 0x29b   : > { %v1521_v14 = vpop.f32.mrb[11].mxu1  ;;  %v1764_v17 = vmax.f32 %v2549_v13, 0.0 }
 0x29c   : > { %v1824_v15 = vadd.f32 %v1823_v11, %v1761_v10  ;;  %v1762_v12 = vmax.f32 %v1521_v14, 0.0 }
 0x29e   : > { %v1825_v16 = vadd.f32 %v1824_v15, %v1762_v12 }
 0x2a0   : > { %v1826_v18 = vadd.f32 %v1825_v16, %v1763_v41  ;;  %v2552_v19 = vpop.f32.mrb[12].mxu1 }
 0x2a1   : > { %v1534_v21 = vpop.f32.mrb[13].mxu1  ;;  %v1767_v29 = vmax.f32 %v2552_v19, 0.0 }
 0x2a2   : > { %v1765_v22 = vmax.f32 %v1534_v21, 0.0  ;;  %v1827_v23 = vadd.f32 %v1826_v18, %v1764_v17  ;;  %v2553_v24 = vpop.f32.mrb[14].mxu1 }
 0x2a3   : > { %v1537_v25 = vpop.f32.mrb[15].mxu1  ;;  %v1768_v31 = vmax.f32 %v2553_v24, 0.0 }
 0x2a4   : > { %v1828_v26 = vadd.f32 %v1827_v23, %v1765_v22  ;;  %v1766_v27 = vmax.f32 %v1537_v25, 0.0 }
 0x2a6   : > { %v1829_v30 = vadd.f32 %v1828_v26, %v1766_v27 }
 0x2a8   : > { %v1830_v32 = vadd.f32 %v1829_v30, %v1767_v29  ;;  %v2556_v33 = vpop.f32.mrb[16].mxu1 }
 0x2a9   : > { %v1550_v34 = vpop.f32.mrb[17].mxu1  ;;  %v1771_v42 = vmax.f32 %v2556_v33, 0.0 }
 0x2aa   : > { %v1769_v35 = vmax.f32 %v1550_v34, 0.0  ;;  %v1831_v36 = vadd.f32 %v1830_v32, %v1768_v31  ;;  %v2557_v37 = vpop.f32.mrb[18].mxu1 }
 0x2ab   : > { %v1553_v38 = vpop.f32.mrb[19].mxu1  ;;  %v1772_v44 = vmax.f32 %v2557_v37, 0.0 }
 0x2ac   : > { %v1832_v39 = vadd.f32 %v1831_v36, %v1769_v35  ;;  %v1770_v40 = vmax.f32 %v1553_v38, 0.0 }
 0x2ae   : > { %v1833_v43 = vadd.f32 %v1832_v39, %v1770_v40 }
 0x2b0   : > { %v1834_v45 = vadd.f32 %v1833_v43, %v1771_v42  ;;  %v2560_v46 = vpop.f32.mrb[20].mxu1 }
 0x2b1   : > { %v1566_v47 = vpop.f32.mrb[21].mxu1  ;;  %v1775_v54 = vmax.f32 %v2560_v46, 0.0 }
 0x2b2   : > { %v1773_v48 = vmax.f32 %v1566_v47, 0.0  ;;  %v1835_v49 = vadd.f32 %v1834_v45, %v1772_v44  ;;  %v2561_v50 = vpop.f32.mrb[22].mxu1 }
 0x2b3   : > { %v1569_v51 = vpop.f32.mrb[23].mxu1  ;;  %v1776_v56 = vmax.f32 %v2561_v50, 0.0 }
 0x2b4   : > { %v1836_v52 = vadd.f32 %v1835_v49, %v1773_v48  ;;  %v1774_v53 = vmax.f32 %v1569_v51, 0.0 }
 0x2b6   : > { %v1837_v55 = vadd.f32 %v1836_v52, %v1774_v53 }
 0x2b8   : > { %v1838_v57 = vadd.f32 %v1837_v55, %v1775_v54  ;;  %v2564_v58 = vpop.f32.mrb[24].mxu1 }
 0x2b9   : > { %v1582_v20 = vpop.f32.mrb[25].mxu1  ;;  %v1779_v1 = vmax.f32 %v2564_v58, 0.0 }
 0x2ba   : > { %v1777_v59 = vmax.f32 %v1582_v20, 0.0  ;;  %v1839_v60 = vadd.f32 %v1838_v57, %v1776_v56  ;;  %v2565_v61 = vpop.f32.mrb[26].mxu1 }
 0x2bb   : > { %v1585_v62 = vpop.f32.mrb[27].mxu1  ;;  %v1780_v3 = vmax.f32 %v2565_v61, 0.0 }
 0x2bc   : > { %v1840_v63 = vadd.f32 %v1839_v60, %v1777_v59  ;;  %v1778_v0 = vmax.f32 %v1585_v62, 0.0 }
 0x2be   : > { %v1841_v2 = vadd.f32 %v1840_v63, %v1778_v0 }
 0x2c0   : > { %v1842_v4 = vadd.f32 %v1841_v2, %v1779_v1  ;;  %v2568_v5 = vpop.f32.mrb[28].mxu1 }
 0x2c1   : > { %v1598_v6 = vpop.f32.mrb[29].mxu1  ;;  %v1783_v14 = vmax.f32 %v2568_v5, 0.0 }
 0x2c2   : > { %v1781_v7 = vmax.f32 %v1598_v6, 0.0  ;;  %v1843_v8 = vadd.f32 %v1842_v4, %v1780_v3  ;;  %v2569_v9 = vpop.f32.mrb[30].mxu1 }
 0x2c3   : > { %v1601_v10 = vpop.f32.mrb[31].mxu1  ;;  %v1784_v12 = vmax.f32 %v2569_v9, 0.0 }
 0x2c4   : > { %v1844_v11 = vadd.f32 %v1843_v8, %v1781_v7  ;;  %v1782_v13 = vmax.f32 %v1601_v10, 0.0 }
 0x2c6   : > { %v1845_v15 = vadd.f32 %v1844_v11, %v1782_v13 }
 0x2c8   : > { %v1846_v41 = vadd.f32 %v1845_v15, %v1783_v14  ;;  %v2572_v16 = vpop.f32.mrb[32].mxu1 }
 0x2c9   : > { %v1614_v17 = vpop.f32.mrb[33].mxu1  ;;  %v1787_v25 = vmax.f32 %v2572_v16, 0.0 }
 0x2ca   : > { %v1785_v18 = vmax.f32 %v1614_v17, 0.0  ;;  %v1847_v19 = vadd.f32 %v1846_v41, %v1784_v12  ;;  %v2573_v21 = vpop.f32.mrb[34].mxu1 }
 0x2cb   : > { %v1617_v22 = vpop.f32.mrb[35].mxu1  ;;  %v1788_v27 = vmax.f32 %v2573_v21, 0.0 }
 0x2cc   : > { %v1848_v23 = vadd.f32 %v1847_v19, %v1785_v18  ;;  %v1786_v24 = vmax.f32 %v1617_v22, 0.0 }
 0x2ce   : > { %v1849_v26 = vadd.f32 %v1848_v23, %v1786_v24 }
 0x2d0   : > { %v1850_v28 = vadd.f32 %v1849_v26, %v1787_v25  ;;  %v2576_v29 = vpop.f32.mrb[36].mxu1 }
 0x2d1   : > { %v1630_v30 = vpop.f32.mrb[37].mxu1  ;;  %v1791_v36 = vmax.f32 %v2576_v29, 0.0 }
 0x2d2   : > { %v2935_v31 = vadd.f32 %v1850_v28, %v1788_v27  ;;  %v2577_v32 = vpop.f32.mrb[38].mxu1  ;;  %v1789_v34 = vmax.f32 %v1630_v30, 0.0 }
 0x2d3   : > { %v1633_v33 = vpop.f32.mrb[39].mxu1  ;;  %v1792_v38 = vmax.f32 %v2577_v32, 0.0 }
 0x2d4   : > { %v1790_v35 = vmax.f32 %v1633_v33, 0.0 }
 0x2d6   : > { %v1858_v37 = vadd.f32 %v1790_v35, %v1789_v34 }
 0x2d8   : > { %v1859_v39 = vadd.f32 %v1858_v37, %v1791_v36  ;;  %v2580_v40 = vpop.f32.mrb[40].mxu1 }
 0x2d9   : > { %v1646_v42 = vpop.f32.mrb[41].mxu1  ;;  %v1795_v49 = vmax.f32 %v2580_v40, 0.0 }
 0x2da   : > { %v1793_v43 = vmax.f32 %v1646_v42, 0.0  ;;  %v1860_v44 = vadd.f32 %v1859_v39, %v1792_v38  ;;  %v2581_v45 = vpop.f32.mrb[42].mxu1 }
 0x2db   : > { %v1649_v46 = vpop.f32.mrb[43].mxu1  ;;  %v1796_v51 = vmax.f32 %v2581_v45, 0.0 }
 0x2dc   : > { %v1861_v47 = vadd.f32 %v1860_v44, %v1793_v43  ;;  %v1794_v48 = vmax.f32 %v1649_v46, 0.0  ;;  %v1852_v44 = vrot.slane %v2935_v31, 4 }
 0x2de   : > { %v1862_v50 = vadd.f32 %v1861_v47, %v1794_v48 }
 0x2e0   : > { %v1863_v52 = vadd.f32 %v1862_v50, %v1795_v49  ;;  %v2584_v53 = vpop.f32.mrb[44].mxu1  ;;  %v1853_v49 = vadd.f32 %v1852_v44, %v2935_v31 }
 0x2e1   : > { %v1662_v54 = vpop.f32.mrb[45].mxu1  ;;  %v1799_v60 = vmax.f32 %v2584_v53, 0.0 }
 0x2e2   : > { %v1797_v55 = vmax.f32 %v1662_v54, 0.0  ;;  %v1864_v56 = vadd.f32 %v1863_v52, %v1796_v51  ;;  %v2585_v57 = vpop.f32.mrb[46].mxu1 }
 0x2e3   : > { %v1665_v58 = vpop.f32.mrb[47].mxu1  ;;  %v1800_v62 = vmax.f32 %v2585_v57, 0.0 }
 0x2e4   : > { %v1865_v20 = vadd.f32 %v1864_v56, %v1797_v55  ;;  %v1798_v59 = vmax.f32 %v1665_v58, 0.0  ;;  %v1854_v58 = vrot.slane %v1853_v49, 2 }
 0x2e6   : > { %v1866_v61 = vadd.f32 %v1865_v20, %v1798_v59 }
 0x2e8   : > { %v1867_v63 = vadd.f32 %v1866_v61, %v1799_v60  ;;  %v2588_v0 = vpop.f32.mrb[48].mxu1 }
 0x2e9   : > { %v1678_v1 = vpop.f32.mrb[49].mxu1  ;;  %v1803_v8 = vmax.f32 %v2588_v0, 0.0 }
 0x2ea   : > { %v1801_v2 = vmax.f32 %v1678_v1, 0.0  ;;  %v1868_v3 = vadd.f32 %v1867_v63, %v1800_v62  ;;  %v2589_v4 = vpop.f32.mrb[50].mxu1  ;;  %v1855_v62 = vadd.f32 %v1854_v58, %v1853_v49 }
 0x2eb   : > { %v1681_v5 = vpop.f32.mrb[51].mxu1  ;;  %v1804_v10 = vmax.f32 %v2589_v4, 0.0 }
 0x2ec   : > { %v1869_v6 = vadd.f32 %v1868_v3, %v1801_v2  ;;  %v1802_v7 = vmax.f32 %v1681_v5, 0.0  ;;  %v1856_v2 = vrot.slane %v1855_v62, 1 }
 0x2ee   : > { %v1870_v9 = vadd.f32 %v1869_v6, %v1802_v7  ;;  %v1857_v4 = vadd.f32 %v1856_v2, %v1855_v62 }
 0x2f0   : > { %v1871_v11 = vadd.f32 %v1870_v9, %v1803_v8  ;;  %v2592_v13 = vpop.f32.mrb[52].mxu1  ;;  %v1895_v7 = vmul.f32 0.00390625, %v1857_v4 }
 0x2f1   : > { %v1694_v14 = vpop.f32.mrb[53].mxu1  ;;  %v1807_v19 = vmax.f32 %v2592_v13, 0.0 }
 0x2f2   : > { %v1805_v15 = vmax.f32 %v1694_v14, 0.0  ;;  %v1872_v12 = vadd.f32 %v1871_v11, %v1804_v10  ;;  %v2593_v41 = vpop.f32.mrb[54].mxu1  ;;  %v1897_v10 = vpack.c.bf16 %v1895_v7, %v1895_v7 }
 0x2f3   : > { %v1697_v16 = vpop.f32.mrb[55].mxu1  ;;  %v1808_v22 = vmax.f32 %v2593_v41, 0.0 }
 0x2f4   : > { %v1873_v17 = vadd.f32 %v1872_v12, %v1805_v15  ;;  %v1806_v18 = vmax.f32 %v1697_v16, 0.0  ;;  %v1926_v14 = vunpack.c.l.b16 %v1897_v10  ;;  %v2313_v16 = vld [vmem:[%s2918_s5 + $0x1] ss:$0 sm:$0xff] }
 0x2f6   : > { %v1874_v21 = vadd.f32 %v1873_v17, %v1806_v18 }
 0x2f8   : > { %v1875_v23 = vadd.f32 %v1874_v21, %v1807_v19  ;;  %v2596_v24 = vpop.f32.mrb[56].mxu1 }
 0x2f9   : > { %v1710_v25 = vpop.f32.mrb[57].mxu1  ;;  %v1811_v33 = vmax.f32 %v2596_v24, 0.0 }
 0x2fa   : > { %v1809_v26 = vmax.f32 %v1710_v25, 0.0  ;;  %v1876_v27 = vadd.f32 %v1875_v23, %v1808_v22  ;;  %v2597_v28 = vpop.f32.mrb[58].mxu1 }
 0x2fb   : > { %v1713_v29 = vpop.f32.mrb[59].mxu1  ;;  %v1812_v35 = vmax.f32 %v2597_v28, 0.0 }
 0x2fc   : > { %v1877_v30 = vadd.f32 %v1876_v27, %v1809_v26  ;;  %v1810_v32 = vmax.f32 %v1713_v29, 0.0 }
 0x2fe   : > { %v1878_v34 = vadd.f32 %v1877_v30, %v1810_v32 }
 0x300   : > { %v1879_v36 = vadd.f32 %v1878_v34, %v1811_v33  ;;  %v2600_v37 = vpop.f32.mrb[60].mxu1 }
 0x301   : > { %v1726_v38 = vpop.f32.mrb[61].mxu1  ;;  %v1815_v47 = vmax.f32 %v2600_v37, 0.0 }
 0x302   : > { %v1813_v39 = vmax.f32 %v1726_v38, 0.0  ;;  %v1880_v40 = vadd.f32 %v1879_v36, %v1812_v35  ;;  %v2601_v42 = vpop.f32.mrb[62].mxu1 }
 0x303   : > { %v1729_v43 = vpop.f32.mrb[63].mxu1  ;;  %v1816_v50 = vmax.f32 %v2601_v42, 0.0 }
 0x304   : > { %v1881_v45 = vadd.f32 %v1880_v40, %v1813_v39  ;;  %v1814_v46 = vmax.f32 %v1729_v43, 0.0 }
 0x306   : > { %v1882_v48 = vadd.f32 %v1881_v45, %v1814_v46 }
 0x308   : > { %v1883_v51 = vadd.f32 %v1882_v48, %v1815_v47  ;;  %v2604_v52 = vpop.f32.mrb[64].mxu1 }
 0x309   : > { %v1742_v53 = vpop.f32.mrb[65].mxu1  ;;  %v1819_v60 = vmax.f32 %v2604_v52, 0.0 }
 0x30a   : > { %v1817_v54 = vmax.f32 %v1742_v53, 0.0  ;;  %v1884_v55 = vadd.f32 %v1883_v51, %v1816_v50  ;;  %v2605_v56 = vpop.f32.mrb[66].mxu1 }
 0x30b   : > { %v1745_v57 = vpop.f32.mrb[67].mxu1  ;;  %v1820_v63 = vmax.f32 %v2605_v56, 0.0 }
 0x30c   : > { %v1885_v20 = vadd.f32 %v1884_v55, %v1817_v54  ;;  %v1818_v59 = vmax.f32 %v1745_v57, 0.0 }
 0x30e   : > { %v1886_v61 = vadd.f32 %v1885_v20, %v1818_v59 }
 0x310   : > { %v1887_v0 = vadd.f32 %v1886_v61, %v1819_v60 }
 0x312   : > { %v1888_v1 = vadd.f32 %v1887_v0, %v1820_v63 }
 0x314   : > { %v1889_v3 = vrot.slane %v1888_v1, 4 }
 0x316   : > { %v1890_v31 = vadd.f32 %v1889_v3, %v1888_v1 }
 0x318   : > { %v1891_v5 = vrot.slane %v1890_v31, 2 }
 0x31a   : > { %v1892_v6 = vadd.f32 %v1891_v5, %v1890_v31 }
 0x31c   : > { %v1893_v8 = vrot.slane %v1892_v6, 1 }
 0x31e   : > { %v1894_v9 = vadd.f32 %v1893_v8, %v1892_v6 }
 0x320   : > { %v1896_v11 = vmul.f32 0.00390625, %v1894_v9 }
 0x322   : > { %v1898_v13 = vpack.c.bf16 %v1896_v11, %v1896_v11 }
 0x324   : > { %v1927_v15 = vunpack.c.l.b16 %v1898_v13 }
 0x326   : > { %v1928_v12 = vsel %vm1053_vm1, %v1927_v15, %v1926_v14 }
 0x327   : > { %v1929_v41 = vpack.c.b16 %v1928_v12, %v1928_v12 }
 0x329   : > { %2623 = vmatmul.mubr.bf16.vlgmr.msra.gmra.mrb[64].mxu0 %v1929_v41 }
 0x3fc   : > { %v2013_v17 = vpop.f32.mrb[64].mxu0 }
 0x3fd   : > { %v2014_v18 = vadd.f32 %v2313_v16, %v2013_v17  ;;  %v2624_v19 = vpop.f32.mrb[65].mxu0 }
 0x3fe   : > { %v2016_v21 = vpop.f32.mrb[66].mxu0 }
 0x3ff   : > { %2322 = vst [vmem:[%s2927_s9 + $0x2] sm:$0x3] %v2014_v18  ;;  %v2625_v22 = vpop.f32.mrb[67].mxu0 }
 0x400 PF: > { %s14_s15 = sadd.s32 1, %s2738_s15  }
 0x401   : > { %p11_p4 = scmp.ge.s32.totalorder %s14_s15, 4  }
 0x403   :  { %13 = sbr.rel (!%p11_p4) target bundleno = 1 (0x1), region = 80 }

</bundles_post_ra>
